<compile_context>
chip_gen: v7x
topology: tpu7x:2x2x1
jax: 0.10.0
libtpu: 0.0.40
codegen_flags: <defaults>
</compile_context>

<pallas_src>
import jax
import jax.numpy as jnp
from jax.experimental import pallas as pl
from jax.experimental.pallas import tpu as pltpu


def _round_up(n, m):
    return (n + m - 1) // m * m


def _mlp_kernel(x_ref, w1_ref, b1_ref, w2_ref, b2_ref,
                w3_ref, b3_ref, w4_ref, b4_ref, o_ref):
    # Cast the f32 activation tile to bf16 in-kernel (hides under the DMA;
    # avoids a separate wrapper-side HBM cast pass).
    x = x_ref[...].astype(jnp.bfloat16)

    # Layer 1: Linear(784, c0p) + ReLU   (Dropout = identity in eval)
    h = jnp.dot(x, w1_ref[...], preferred_element_type=jnp.float32)
    h = jnp.maximum(h + b1_ref[...], 0.0)
    # Layer 2: Linear(c0p, c1p) + ReLU
    h = jnp.dot(h.astype(jnp.bfloat16), w2_ref[...],
                preferred_element_type=jnp.float32)
    h = jnp.maximum(h + b2_ref[...], 0.0)
    # Layer 3: Linear(c1p, c2p) + ReLU
    h = jnp.dot(h.astype(jnp.bfloat16), w3_ref[...],
                preferred_element_type=jnp.float32)
    h = jnp.maximum(h + b3_ref[...], 0.0)
    # Output layer: Linear(c2p, 128-padded logits), no activation.
    out = jnp.dot(h.astype(jnp.bfloat16), w4_ref[...],
                  preferred_element_type=jnp.float32) + b4_ref[...]
    # Lane-dense 128-wide bf16 store (halves writeback bytes).
    o_ref[...] = out.astype(o_ref.dtype)


def _pick_tiling(B, tile_b_max):
    """Divisor-based batch tiling: bounds padding waste and keeps tile_b
    bf16-sublane friendly (mult of 16; mult of 128 for large batches)."""
    align = 128 if B >= 128 else 16
    grid_n = -(-B // tile_b_max)               # cdiv
    # v7x megacore: give both TensorCores work for medium batches.
    if grid_n == 1 and B >= 2 * align:
        grid_n = 2
    tile_b = _round_up(-(-B // grid_n), align)
    b_pad = grid_n * tile_b
    return tile_b, b_pad, grid_n


def mnist_feedforward(x_nchw, params, n_out=10, tile_b_max=1024):
    """x_nchw: (B, 1, 28, 28) float32. params: dict of (padded) weights/biases."""
    B = x_nchw.shape[0]
    # nn.Flatten on NCHW -> (B, 784). Stream f32; cast to bf16 inside kernel.
    x_flat = x_nchw.reshape(B, -1)
    D = x_flat.shape[1]

    tile_b, b_pad, grid_n = _pick_tiling(B, tile_b_max)
    if b_pad != B:
        x_flat = jnp.pad(x_flat, ((0, b_pad - B), (0, 0)))

    w1, b1, w2, b2, w3, b3, w4, b4 = (
        params["w1"], params["b1"], params["w2"], params["b2"],
        params["w3"], params["b3"], params["w4"], params["b4"],
    )
    n_out_p = w4.shape[1]   # 128-padded logit width

    def full_spec(a):
        # Whole array resident in VMEM; same block for every grid step.
        return pl.BlockSpec(a.shape, lambda i: (0, 0))

    out_padded = pl.pallas_call(
        _mlp_kernel,
        out_shape=jax.ShapeDtypeStruct((b_pad, n_out_p), jnp.bfloat16),
        grid=(grid_n,),
        in_specs=[pl.BlockSpec((tile_b, D), lambda i: (i, 0))]
                 + [full_spec(a) for a in (w1, b1, w2, b2, w3, b3, w4, b4)],
        out_specs=pl.BlockSpec((tile_b, n_out_p), lambda i: (i, 0)),
        compiler_params=pltpu.CompilerParams(
            dimension_semantics=("parallel",),   # megacore on v7x
            vmem_limit_bytes=40 << 20,           # > v5e 16 MiB default, < v7x 64 MiB/TC
        ),
    )(x_flat, w1, b1, w2, b2, w3, b3, w4, b4)

    # Slice away batch padding and the zero logit columns; back to f32.
    return out_padded[:B, :n_out].astype(jnp.float32)


def _init_linear(key, fan_in, fan_out, fan_in_pad, fan_out_pad):
    """PyTorch nn.Linear default init U(-1/sqrt(fan_in), 1/sqrt(fan_in)),
    zero-padded to lane-aligned shapes. Weights bf16, biases f32."""
    kw, kb = jax.random.split(key)
    bound = 1.0 / jnp.sqrt(float(fan_in))
    w = jax.random.uniform(kw, (fan_in, fan_out), jnp.float32, -bound, bound)
    b = jax.random.uniform(kb, (fan_out,), jnp.float32, -bound, bound)
    w_pad = jnp.zeros((fan_in_pad, fan_out_pad), jnp.float32).at[:fan_in, :fan_out].set(w)
    b_pad = jnp.zeros((1, fan_out_pad), jnp.float32).at[0, :fan_out].set(b)
    return w_pad.astype(jnp.bfloat16), b_pad


def init_params(key, channels, n_out=10):
    c0, c1, c2 = channels
    c0p, c1p, c2p = (_round_up(c, 128) for c in (c0, c1, c2))
    n_out_p = _round_up(n_out, 128)
    k1, k2, k3, k4 = jax.random.split(key, 4)
    w1, b1 = _init_linear(k1, 28 * 28, c0, 28 * 28, c0p)
    w2, b2 = _init_linear(k2, c0, c1, c0p, c1p)
    w3, b3 = _init_linear(k3, c1, c2, c1p, c2p)
    w4, b4 = _init_linear(k4, c2, n_out, c2p, n_out_p)
    return dict(w1=w1, b1=b1, w2=w2, b2=b2, w3=w3, b3=b3, w4=w4, b4=b4)


def _reference(x_nchw, p, n_out=10):
    """Pure-JAX reference mirroring the kernel math (bf16 stream/weights,
    f32 accumulation, bf16 logit store)."""
    h = x_nchw.reshape(x_nchw.shape[0], -1).astype(jnp.bfloat16)
    h = jnp.maximum(jnp.dot(h, p["w1"], preferred_element_type=jnp.float32) + p["b1"], 0.0)
    h = jnp.maximum(jnp.dot(h.astype(jnp.bfloat16), p["w2"],
                            preferred_element_type=jnp.float32) + p["b2"], 0.0)
    h = jnp.maximum(jnp.dot(h.astype(jnp.bfloat16), p["w3"],
                            preferred_element_type=jnp.float32) + p["b3"], 0.0)
    out = jnp.dot(h.astype(jnp.bfloat16), p["w4"],
                  preferred_element_type=jnp.float32) + p["b4"]
    return out.astype(jnp.bfloat16)[:, :n_out].astype(jnp.float32)


if __name__ == "__main__":
    key = jax.random.PRNGKey(0)
    k_params, k_x = jax.random.split(key)

    channels = [128, 64, 32]           # channels[0:3]; output is fixed at 10
    batch = 2
    params = init_params(k_params, channels)
    x = jax.random.normal(k_x, (batch, 1, 28, 28), jnp.float32)  # NCHW MNIST-like

    out = mnist_feedforward(x, params)
    out = jax.block_until_ready(out)

    ref = _reference(x, params)
    assert out.shape == (batch, 10), out.shape
    assert jnp.allclose(out, ref, atol=1e-2, rtol=1e-2), "mismatch vs reference"

    print("KERNEL_OK")
</pallas_src>

<mosaic_0001>
module attributes {stable_mosaic.version = 11 : i64} {
  func.func @_mlp_kernel(%arg0: i32, %arg1: memref<16x784xf32, #tpu.memory_space<vmem>>, %arg2: memref<784x128xbf16, #tpu.memory_space<vmem>>, %arg3: memref<1x128xf32, #tpu.memory_space<vmem>>, %arg4: memref<128x128xbf16, #tpu.memory_space<vmem>>, %arg5: memref<1x128xf32, #tpu.memory_space<vmem>>, %arg6: memref<128x128xbf16, #tpu.memory_space<vmem>>, %arg7: memref<1x128xf32, #tpu.memory_space<vmem>>, %arg8: memref<128x128xbf16, #tpu.memory_space<vmem>>, %arg9: memref<1x128xf32, #tpu.memory_space<vmem>>, %arg10: memref<16x128xbf16, #tpu.memory_space<vmem>>) attributes {dimension_semantics = [#tpu.dimension_semantics<parallel>], iteration_bounds = array<i64: 1>, scalar_prefetch = 0 : i64, scratch_operands = 0 : i64, tpu.core_type = #tpu.core_type<tc>, window_params = [{transform_indices = @transform_0, window_bounds = array<i64: 16, 784>}, {pipeline_mode = #tpu.pipeline_mode<synchronous>, transform_indices = @transform_1, window_bounds = array<i64: 784, 128>}, {pipeline_mode = #tpu.pipeline_mode<synchronous>, transform_indices = @transform_2, window_bounds = array<i64: 1, 128>}, {pipeline_mode = #tpu.pipeline_mode<synchronous>, transform_indices = @transform_3, window_bounds = array<i64: 128, 128>}, {pipeline_mode = #tpu.pipeline_mode<synchronous>, transform_indices = @transform_4, window_bounds = array<i64: 1, 128>}, {pipeline_mode = #tpu.pipeline_mode<synchronous>, transform_indices = @transform_5, window_bounds = array<i64: 128, 128>}, {pipeline_mode = #tpu.pipeline_mode<synchronous>, transform_indices = @transform_6, window_bounds = array<i64: 1, 128>}, {pipeline_mode = #tpu.pipeline_mode<synchronous>, transform_indices = @transform_7, window_bounds = array<i64: 128, 128>}, {pipeline_mode = #tpu.pipeline_mode<synchronous>, transform_indices = @transform_8, window_bounds = array<i64: 1, 128>}, {transform_indices = @transform_9, window_bounds = array<i64: 16, 128>}]} {
    %c0 = arith.constant 0 : index
    %c0_0 = arith.constant 0 : index
    %0 = vector.load %arg1[%c0, %c0_0] : memref<16x784xf32, #tpu.memory_space<vmem>>, vector<16x784xf32>
    %1 = arith.truncf %0 : vector<16x784xf32> to vector<16x784xbf16>
    %c0_1 = arith.constant 0 : index
    %c0_2 = arith.constant 0 : index
    %2 = vector.load %arg2[%c0_1, %c0_2] : memref<784x128xbf16, #tpu.memory_space<vmem>>, vector<784x128xbf16>
    %cst = arith.constant dense<0.000000e+00> : vector<16x128xf32>
    %3 = tpu.matmul %1, %2, %cst {dimension_numbers = #tpu.dot_dimension_numbers<[1], [0], [0], [1], [0, 0, 1, 1], [], []>} : vector<16x784xbf16>, vector<784x128xbf16>, vector<16x128xf32> -> vector<16x128xf32>
    %c0_3 = arith.constant 0 : index
    %c0_4 = arith.constant 0 : index
    %4 = vector.load %arg3[%c0_3, %c0_4] : memref<1x128xf32, #tpu.memory_space<vmem>>, vector<1x128xf32>
    %5 = vector.broadcast %4 : vector<1x128xf32> to vector<16x128xf32>
    %6 = arith.addf %3, %5 : vector<16x128xf32>
    %cst_5 = arith.constant 0.000000e+00 : f32
    %7 = vector.broadcast %cst_5 : f32 to vector<16x128xf32>
    %8 = arith.maximumf %6, %7 : vector<16x128xf32>
    %9 = arith.truncf %8 : vector<16x128xf32> to vector<16x128xbf16>
    %c0_6 = arith.constant 0 : index
    %c0_7 = arith.constant 0 : index
    %10 = vector.load %arg4[%c0_6, %c0_7] : memref<128x128xbf16, #tpu.memory_space<vmem>>, vector<128x128xbf16>
    %cst_8 = arith.constant dense<0.000000e+00> : vector<16x128xf32>
    %11 = tpu.matmul %9, %10, %cst_8 {dimension_numbers = #tpu.dot_dimension_numbers<[1], [0], [0], [1], [0, 0, 1, 1], [], []>} : vector<16x128xbf16>, vector<128x128xbf16>, vector<16x128xf32> -> vector<16x128xf32>
    %c0_9 = arith.constant 0 : index
    %c0_10 = arith.constant 0 : index
    %12 = vector.load %arg5[%c0_9, %c0_10] : memref<1x128xf32, #tpu.memory_space<vmem>>, vector<1x128xf32>
    %13 = vector.broadcast %12 : vector<1x128xf32> to vector<16x128xf32>
    %14 = arith.addf %11, %13 : vector<16x128xf32>
    %cst_11 = arith.constant 0.000000e+00 : f32
    %15 = vector.broadcast %cst_11 : f32 to vector<16x128xf32>
    %16 = arith.maximumf %14, %15 : vector<16x128xf32>
    %17 = arith.truncf %16 : vector<16x128xf32> to vector<16x128xbf16>
    %c0_12 = arith.constant 0 : index
    %c0_13 = arith.constant 0 : index
    %18 = vector.load %arg6[%c0_12, %c0_13] : memref<128x128xbf16, #tpu.memory_space<vmem>>, vector<128x128xbf16>
    %cst_14 = arith.constant dense<0.000000e+00> : vector<16x128xf32>
    %19 = tpu.matmul %17, %18, %cst_14 {dimension_numbers = #tpu.dot_dimension_numbers<[1], [0], [0], [1], [0, 0, 1, 1], [], []>} : vector<16x128xbf16>, vector<128x128xbf16>, vector<16x128xf32> -> vector<16x128xf32>
    %c0_15 = arith.constant 0 : index
    %c0_16 = arith.constant 0 : index
    %20 = vector.load %arg7[%c0_15, %c0_16] : memref<1x128xf32, #tpu.memory_space<vmem>>, vector<1x128xf32>
    %21 = vector.broadcast %20 : vector<1x128xf32> to vector<16x128xf32>
    %22 = arith.addf %19, %21 : vector<16x128xf32>
    %cst_17 = arith.constant 0.000000e+00 : f32
    %23 = vector.broadcast %cst_17 : f32 to vector<16x128xf32>
    %24 = arith.maximumf %22, %23 : vector<16x128xf32>
    %25 = arith.truncf %24 : vector<16x128xf32> to vector<16x128xbf16>
    %c0_18 = arith.constant 0 : index
    %c0_19 = arith.constant 0 : index
    %26 = vector.load %arg8[%c0_18, %c0_19] : memref<128x128xbf16, #tpu.memory_space<vmem>>, vector<128x128xbf16>
    %cst_20 = arith.constant dense<0.000000e+00> : vector<16x128xf32>
    %27 = tpu.matmul %25, %26, %cst_20 {dimension_numbers = #tpu.dot_dimension_numbers<[1], [0], [0], [1], [0, 0, 1, 1], [], []>} : vector<16x128xbf16>, vector<128x128xbf16>, vector<16x128xf32> -> vector<16x128xf32>
    %c0_21 = arith.constant 0 : index
    %c0_22 = arith.constant 0 : index
    %28 = vector.load %arg9[%c0_21, %c0_22] : memref<1x128xf32, #tpu.memory_space<vmem>>, vector<1x128xf32>
    %29 = vector.broadcast %28 : vector<1x128xf32> to vector<16x128xf32>
    %30 = arith.addf %27, %29 : vector<16x128xf32>
    %31 = arith.truncf %30 : vector<16x128xf32> to vector<16x128xbf16>
    %c0_23 = arith.constant 0 : index
    %c0_24 = arith.constant 0 : index
    %32 = vector.load %arg10[%c0_23, %c0_24] : memref<16x128xbf16, #tpu.memory_space<vmem>>, vector<16x128xbf16>
    tpu.vector_store %arg10[%c0_23, %c0_24], %31 {strides = array<i32>} : memref<16x128xbf16, #tpu.memory_space<vmem>>, vector<16x128xbf16>,
    return
  }
  func.func @transform_0(%arg0: i32) -> (i32, i32) {
    %c0_i32 = arith.constant 0 : i32
    %c0_i32_0 = arith.constant 0 : i32
    return %arg0, %c0_i32 : i32, i32
  }
  func.func @transform_1(%arg0: i32) -> (i32, i32) {
    %c0_i32 = arith.constant 0 : i32
    %c0_i32_0 = arith.constant 0 : i32
    %c0_i32_1 = arith.constant 0 : i32
    return %c0_i32, %c0_i32_0 : i32, i32
  }
  func.func @transform_2(%arg0: i32) -> (i32, i32) {
    %c0_i32 = arith.constant 0 : i32
    %c0_i32_0 = arith.constant 0 : i32
    %c0_i32_1 = arith.constant 0 : i32
    return %c0_i32, %c0_i32_0 : i32, i32
  }
  func.func @transform_3(%arg0: i32) -> (i32, i32) {
    %c0_i32 = arith.constant 0 : i32
    %c0_i32_0 = arith.constant 0 : i32
    %c0_i32_1 = arith.constant 0 : i32
    return %c0_i32, %c0_i32_0 : i32, i32
  }
  func.func @transform_4(%arg0: i32) -> (i32, i32) {
    %c0_i32 = arith.constant 0 : i32
    %c0_i32_0 = arith.constant 0 : i32
    %c0_i32_1 = arith.constant 0 : i32
    return %c0_i32, %c0_i32_0 : i32, i32
  }
  func.func @transform_5(%arg0: i32) -> (i32, i32) {
    %c0_i32 = arith.constant 0 : i32
    %c0_i32_0 = arith.constant 0 : i32
    %c0_i32_1 = arith.constant 0 : i32
    return %c0_i32, %c0_i32_0 : i32, i32
  }
  func.func @transform_6(%arg0: i32) -> (i32, i32) {
    %c0_i32 = arith.constant 0 : i32
    %c0_i32_0 = arith.constant 0 : i32
    %c0_i32_1 = arith.constant 0 : i32
    return %c0_i32, %c0_i32_0 : i32, i32
  }
  func.func @transform_7(%arg0: i32) -> (i32, i32) {
    %c0_i32 = arith.constant 0 : i32
    %c0_i32_0 = arith.constant 0 : i32
    %c0_i32_1 = arith.constant 0 : i32
    return %c0_i32, %c0_i32_0 : i32, i32
  }
  func.func @transform_8(%arg0: i32) -> (i32, i32) {
    %c0_i32 = arith.constant 0 : i32
    %c0_i32_0 = arith.constant 0 : i32
    %c0_i32_1 = arith.constant 0 : i32
    return %c0_i32, %c0_i32_0 : i32, i32
  }
  func.func @transform_9(%arg0: i32) -> (i32, i32) {
    %c0_i32 = arith.constant 0 : i32
    %c0_i32_0 = arith.constant 0 : i32
    return %arg0, %c0_i32 : i32, i32
  }
}

</mosaic_0001>

<bundles_post_ra>
// kernel: tpu_custom_call.1
= control target key start
LH: loop header
LB: loop body
LE: loop exit
PB: predicated region body
PF: predicated region fallthrough
CT: control target
= control target key end

     0   :  { %14 = vsyncpa [#allocation3], 0  ;;  %s1731_s0 = inlined_call_operand.hbm [shape: f32[16,784], index: 0, kind: input, shape index: {}]   ;;  %s1732_s1 = inlined_call_operand.hbm [shape: bf16[784,128], index: 1, kind: input, shape index: {}]   ;;  %s1733_s2 = inlined_call_operand.vmem [shape: f32[1,128], index: 2, kind: input, shape index: {}]   ;;  %s1734_s3 = inlined_call_operand.hbm [shape: bf16[128,128], index: 3, kind: input, shape index: {}]   ;;  %s1735_s4 = inlined_call_operand.vmem [shape: f32[1,128], index: 4, kind: input, shape index: {}]   ;;  %s1736_s5 = inlined_call_operand.hbm [shape: bf16[128,128], index: 5, kind: input, shape index: {}]   ;;  %s1737_s6 = inlined_call_operand.vmem [shape: f32[1,128], index: 6, kind: input, shape index: {}]   ;;  %s1738_s7 = inlined_call_operand.hbm [shape: bf16[128,128], index: 7, kind: input, shape index: {}]   ;;  %s1739_s8 = inlined_call_operand.vmem [shape: f32[1,128], index: 8, kind: input, shape index: {}]   ;;  %s1740_s9 = inlined_call_operand.hbm [shape: bf16[16,128], index: 9, kind: output, shape index: {}]  }
   0x1   :  { %15 = vsyncpa [#allocation6], 0 }
   0x2   :  { %16 = vsyncpa [#allocation9], 0 }
   0x3   :  { %17 = vsyncpa [#allocation4], 0  ;;  %s1537_s30 = smov [#allocation5]   ;;  %s1397_s13 = scalar_lea.hbm %s1732_s1, 6272 }
   0x4   :  { %s35_s10 = sshll.u32 %s1537_s30, 4  ;;  %p1398_p0 = scmp.ne.s32.totalorder %s1732_s1, %s1397_s13  ;;  %s36_s10 = int_to_ptr.vmem [resolvable:$true] %s35_s10 }
   0x5   :  { %p1401_p1 = scmp.lt.u32.totalorder %s1397_s13, %s1732_s1 }
   0x7   :  { %p1403_p2 = pnand %p1401_p1, %p1398_p0 }
   0x9   :  { %1406 = shalt.err (!%p1403_p2)
}
   0xa   :  { %s1407_s18 = scalar_lea.vmem %s36_s10, 6272  ;;  %p1412_p4 = scmp.lt.s32.totalorder %s36_s10, %s36_s10 }
   0xb   :  { %p1408_p3 = scmp.ne.s32.totalorder %s36_s10, %s1407_s18  ;;  %p1413_p5 = scmp.lt.s32.totalorder %s1407_s18, %s1407_s18 }
   0xd   :  { %p1414_p6 = por %p1413_p5, %p1412_p4 }
   0xf   :  { %p1415_p7 = pnand %p1414_p6, %p1408_p3 }
  0x11   :  { %1418 = shalt.err (!%p1415_p7)
}
  0x12   :  { %s1538_s19 = smov 64   ;;  %s1539_s20 = smov 4  }
  0x13   :  { %41 = dma.hbm_to_vmem [thread:$0]  %s1732_s1, 6272, %s36_s10, [#allocation6], %s1538_s19, %s1538_s19, %s1539_s20  }
  0x14   :  { %s1540_s23 = smov [#allocation8]   ;;  %s1541_s25 = smov [#allocation2]  }
  0x15   :  { %s63_s24 = sshll.u32 %s1540_s23, 4  ;;  %s23_s26 = sshll.u32 %s1541_s25, 4  ;;  %s64_s24 = int_to_ptr.vmem [resolvable:$true] %s63_s24  ;;  %s24_s26 = int_to_ptr.vmem [resolvable:$true] %s23_s26 }
  0x16   :  { %s1419_s29 = scalar_lea.hbm %s1736_s5, 1024 }
  0x17   :  { %p1420_p8 = scmp.ne.s32.totalorder %s1736_s5, %s1419_s29  ;;  %p1423_p9 = scmp.lt.u32.totalorder %s1419_s29, %s1736_s5 }
  0x19   :  { %p1425_p10 = pnand %p1423_p9, %p1420_p8 }
  0x1b   :  { %1428 = shalt.err (!%p1425_p10)
}
  0x1c   :  { %s1429_s1 = scalar_lea.vmem %s64_s24, 1024  ;;  %p1434_p12 = scmp.lt.s32.totalorder %s64_s24, %s64_s24 }
  0x1d   :  { %p1430_p11 = scmp.ne.s32.totalorder %s64_s24, %s1429_s1  ;;  %p1435_p13 = scmp.lt.s32.totalorder %s1429_s1, %s1429_s1 }
  0x1f   :  { %p1436_p0 = por %p1435_p13, %p1434_p12 }
  0x21   :  { %p1437_p1 = pnand %p1436_p0, %p1430_p11 }
  0x23   :  { %1440 = shalt.err (!%p1437_p1)
}
  0x24   :  { %69 = dma.hbm_to_vmem [thread:$0]  %s1736_s5, 1024, %s64_s24, [#allocation9], %s1538_s19, %s1538_s19, %s1539_s20  }
  0x25   :  { %s1441_s17 = scalar_lea.hbm %s1731_s0, 1792 }
  0x26   :  { %p1442_p2 = scmp.ne.s32.totalorder %s1731_s0, %s1441_s17  ;;  %p1445_p3 = scmp.lt.u32.totalorder %s1441_s17, %s1731_s0 }
  0x28   :  { %p1447_p4 = pnand %p1445_p3, %p1442_p2 }
  0x2a   :  { %1450 = shalt.err (!%p1447_p4)
}
  0x2b   :  { %s1451_s25 = scalar_lea.vmem %s24_s26, 1792  ;;  %p1456_p6 = scmp.lt.s32.totalorder %s24_s26, %s24_s26 }
  0x2c   :  { %p1452_p5 = scmp.ne.s32.totalorder %s24_s26, %s1451_s25  ;;  %p1457_p7 = scmp.lt.s32.totalorder %s1451_s25, %s1451_s25 }
  0x2e   :  { %p1458_p8 = por %p1457_p7, %p1456_p6 }
  0x30   :  { %p1459_p9 = pnand %p1458_p8, %p1452_p5 }
  0x32   :  { %1462 = shalt.err (!%p1459_p9)
}
  0x33   :  { %s1542_s5 = smov 896   ;;  %s1543_s24 = smov 56  }
  0x34   :  { %29 = dma.hbm_to_vmem [thread:$0]  %s1731_s0, 1792, %s24_s26, [#allocation3], %s1542_s5, %s1542_s5, %s1543_s24  }
  0x35   :  { %s1544_s29 = smov [#allocation7]   ;;  %s1545_s11 = smov [#allocation10]  }
  0x36   :  { %s49_s30 = sshll.u32 %s1544_s29, 4  ;;  %s77_s12 = sshll.u32 %s1545_s11, 4  ;;  %s50_s30 = int_to_ptr.vmem [resolvable:$true] %s49_s30  ;;  %s78_s12 = int_to_ptr.vmem [resolvable:$true] %s77_s12 }
  0x37   :  { %s1463_s10 = scalar_lea.hbm %s1734_s3, 1024 }
  0x38   :  { %p1464_p10 = scmp.ne.s32.totalorder %s1734_s3, %s1463_s10  ;;  %p1467_p11 = scmp.lt.u32.totalorder %s1463_s10, %s1734_s3 }
  0x3a   :  { %p1469_p12 = pnand %p1467_p11, %p1464_p10 }
  0x3c   :  { %1472 = shalt.err (!%p1469_p12)
}
  0x3d   :  { %s1473_s0 = scalar_lea.vmem %s50_s30, 1024  ;;  %p1478_p0 = scmp.lt.s32.totalorder %s50_s30, %s50_s30 }
  0x3e   :  { %p1474_p13 = scmp.ne.s32.totalorder %s50_s30, %s1473_s0  ;;  %p1479_p1 = scmp.lt.s32.totalorder %s1473_s0, %s1473_s0 }
  0x40   :  { %p1480_p2 = por %p1479_p1, %p1478_p0 }
  0x42   :  { %p1481_p3 = pnand %p1480_p2, %p1474_p13 }
  0x44   :  { %1484 = shalt.err (!%p1481_p3)
}
  0x45   :  { %55 = dma.hbm_to_vmem [thread:$0]  %s1734_s3, 1024, %s50_s30, [#allocation6], %s1538_s19, %s1538_s19, %s1539_s20  }
  0x46   :  { %s1485_s23 = scalar_lea.hbm %s1738_s7, 1024 }
  0x47   :  { %p1486_p4 = scmp.ne.s32.totalorder %s1738_s7, %s1485_s23  ;;  %p1489_p5 = scmp.lt.u32.totalorder %s1485_s23, %s1738_s7 }
  0x49   :  { %p1491_p6 = pnand %p1489_p5, %p1486_p4 }
  0x4b   :  { %1494 = shalt.err (!%p1491_p6)
}
  0x4c   :  { %s1495_s28 = scalar_lea.vmem %s78_s12, 1024  ;;  %p1500_p8 = scmp.lt.s32.totalorder %s78_s12, %s78_s12 }
  0x4d   :  { %p1496_p7 = scmp.ne.s32.totalorder %s78_s12, %s1495_s28  ;;  %p1501_p9 = scmp.lt.s32.totalorder %s1495_s28, %s1495_s28 }
  0x4f   :  { %p1502_p10 = por %p1501_p9, %p1500_p8 }
  0x51   :  { %p1503_p11 = pnand %p1502_p10, %p1496_p7 }
  0x53   :  { %1506 = shalt.err (!%p1503_p11)
}
  0x54   :  { %83 = dma.hbm_to_vmem [thread:$0]  %s1738_s7, 1024, %s78_s12, [#allocation9], %s1538_s19, %s1538_s19, %s1539_s20  }
  0x55   :  { %1529 = dma.done.wait [#allocation3], 1792  }
  0x56   :  { %1530 = vsyncadd [#allocation3], 4294965504 }
  0x57   :  { %1531 = dma.done.wait [#allocation6], 7296  }
  0x58   :  { %1532 = vsyncadd [#allocation6], 4294960000 }
  0x59   :  { %1533 = dma.done.wait [#allocation9], 2048  }
  0x5a   :  { %1534 = vsyncadd [#allocation9], 4294965248  ;;  %v1324_v0 = vld [vmem:[#allocation5 + $0x40] sm:$0xff]   ;;  %v1328_v4 = vld [vmem:[#allocation5 + $0x48] sm:$0xff]   ;;  %v1546_v43 = vmov 0.0   ;;  %vm1547_vm0 = vmmov 0  }
  0x5b   :  { %v1325_v1 = vld [vmem:[#allocation5] sm:$0xff]   ;;  %1151 = vmatprep.subr.bf16.mxu0 %v1324_v0  ;;  %v1329_v5 = vld [vmem:[#allocation5 + $0x8] sm:$0xff]   ;;  %v1332_v8 = vld [vmem:[#allocation5 + $0x50] sm:$0xff]   ;;  %vm522_vm1 = vcmask 130048   ;;  %s1548_s10 = smov [#allocation11]  }
  0x5c   :  { %v1326_v2 = vld [vmem:[#allocation5 + $0xc0] sm:$0xff]   ;;  %1152 = vmatpush3.bf16.msra.mxu0 %v1325_v1  ;;  %v1330_v6 = vld [vmem:[#allocation5 + $0xc8] sm:$0xff]   ;;  %v1333_v9 = vld [vmem:[#allocation5 + $0x10] sm:$0xff]   ;;  %s1050_s14 = sshll.u32 %s1548_s10, 4  ;;  %s1051_s14 = int_to_ptr.vmem [resolvable:$true] %s1050_s14 }
  0x5d   :  { %v1327_v3 = vld [vmem:[#allocation5 + $0x80] sm:$0xff]   ;;  %1173 = vmatprep.subr.bf16.mxu1 %v1326_v2  ;;  %1153 = vmatprep.subr.bf16.mxu0 %v1328_v4  ;;  %v1331_v7 = vld [vmem:[#allocation5 + $0x88] sm:$0xff]   ;;  %v1334_v10 = vld [vmem:[#allocation5 + $0xd0] sm:$0xff]   ;;  %p1512_p13 = scmp.lt.s32.totalorder %s1051_s14, %s1051_s14 }
  0x5e   :  { %1174 = vmatpush3.bf16.msra.mxu1 %v1327_v3  ;;  %v1335_v11 = vld [vmem:[#allocation5 + $0x90] sm:$0xff]   ;;  %v1336_v12 = vld [vmem:[#allocation5 + $0x58] sm:$0xff]   ;;  %v1340_v16 = vld [vmem:[#allocation5 + $0x60] sm:$0xff]  }
  0x5f   :  { %1175 = vmatprep.subr.bf16.mxu1 %v1330_v6  ;;  %v1337_v13 = vld [vmem:[#allocation5 + $0x18] sm:$0xff]   ;;  %v1341_v17 = vld [vmem:[#allocation5 + $0x20] sm:$0xff]   ;;  %v1344_v20 = vld [vmem:[#allocation5 + $0x68] sm:$0xff]  }
  0x60   :  { %1154 = vmatpush3.bf16.msra.mxu0 %v1329_v5  ;;  %v1338_v14 = vld [vmem:[#allocation5 + $0xd8] sm:$0xff]   ;;  %v1342_v18 = vld [vmem:[#allocation5 + $0xe0] sm:$0xff]   ;;  %v1345_v21 = vld [vmem:[#allocation5 + $0x28] sm:$0xff]  }
  0x61   :  { %1155 = vmatprep.subr.bf16.mxu0 %v1332_v8  ;;  %v1339_v15 = vld [vmem:[#allocation5 + $0x98] sm:$0xff]   ;;  %v1343_v19 = vld [vmem:[#allocation5 + $0xa0] sm:$0xff]   ;;  %v1346_v22 = vld [vmem:[#allocation5 + $0xe8] sm:$0xff]  }
  0x62   :  { %1176 = vmatpush3.bf16.msra.mxu1 %v1331_v7  ;;  %v1347_v23 = vld [vmem:[#allocation5 + $0xa8] sm:$0xff]   ;;  %v1348_v24 = vld [vmem:[#allocation5 + $0x70] sm:$0xff]   ;;  %v1352_v28 = vld [vmem:[#allocation5 + $0x78] sm:$0xff]  }
  0x63   :  { %1177 = vmatprep.subr.bf16.mxu1 %v1334_v10  ;;  %v1349_v25 = vld [vmem:[#allocation5 + $0x30] sm:$0xff]   ;;  %v1353_v29 = vld [vmem:[#allocation5 + $0x38] sm:$0xff]   ;;  %v109_v36 = vld [vmem:[#allocation2 + $0x38] sm:$0xff] }
  0x64   :  { %1156 = vmatpush3.bf16.msra.mxu0 %v1333_v9  ;;  %v1350_v26 = vld [vmem:[#allocation5 + $0xf0] sm:$0xff]   ;;  %v1354_v30 = vld [vmem:[#allocation5 + $0xf8] sm:$0xff]   ;;  %v1356_v38 = vld [vmem:[#allocation5 + $0x140] sm:$0xff]  }
  0x65   :  { %1157 = vmatprep.subr.bf16.mxu0 %v1336_v12  ;;  %v1351_v27 = vld [vmem:[#allocation5 + $0xb0] sm:$0xff]   ;;  %v103_v31 = vld [vmem:[#allocation2 + $0x8] sm:$0xff]  ;;  %v105_v39 = vld [vmem:[#allocation2 + $0x18] sm:$0xff] }
  0x66   :  { %1178 = vmatpush3.bf16.msra.mxu1 %v1335_v11  ;;  %v110_v32 = vld [vmem:[#allocation2 + $0x40] sm:$0xff]  ;;  %v1355_v34 = vld [vmem:[#allocation5 + $0xb8] sm:$0xff]   ;;  %v112_v40 = vld [vmem:[#allocation2 + $0x50] sm:$0xff] }
  0x67   :  { %1179 = vmatprep.subr.bf16.mxu1 %v1338_v14  ;;  %v117_v33 = vpack.c.bf16 %v110_v32, %v103_v31  ;;  %v102_v35 = vld [vmem:[#allocation2] sm:$0xff]  ;;  %v119_v41 = vpack.c.bf16 %v112_v40, %v105_v39  ;;  %v1357_v42 = vld [vmem:[#allocation5 + $0x100] sm:$0xff]   ;;  %v111_v45 = vld [vmem:[#allocation2 + $0x48] sm:$0xff] }
  0x68   :  { %1158 = vmatpush3.bf16.msra.mxu0 %v1337_v13  ;;  %v116_v37 = vpack.c.bf16 %v109_v36, %v102_v35  ;;  %v104_v44 = vld [vmem:[#allocation2 + $0x10] sm:$0xff]  ;;  %v1358_v47 = vld [vmem:[#allocation5 + $0x148] sm:$0xff]   ;;  %v1360_v49 = vld [vmem:[#allocation5 + $0x150] sm:$0xff]  }
  0x69   :  { %1159 = vmatprep.subr.bf16.mxu0 %v1340_v16  ;;  %558 = vmatprep.mubr.bf16.mxu0 %v117_v33  ;;  %v118_v46 = vpack.c.bf16 %v111_v45, %v104_v44  ;;  %v1359_v48 = vld [vmem:[#allocation5 + $0x108] sm:$0xff]   ;;  %v1361_v50 = vld [vmem:[#allocation5 + $0x110] sm:$0xff]   ;;  %v1362_v51 = vld [vmem:[#allocation5 + $0x158] sm:$0xff]  }
  0x6a   :  { %1180 = vmatpush3.bf16.msra.mxu1 %v1339_v15  ;;  %599 = vmatprep.mubr.bf16.mxu1 %v119_v41  ;;  %v1363_v52 = vld [vmem:[#allocation5 + $0x118] sm:$0xff]   ;;  %v1364_v53 = vld [vmem:[#allocation5 + $0x160] sm:$0xff]   ;;  %v1366_v55 = vld [vmem:[#allocation5 + $0x168] sm:$0xff]  }
  0x6b   :  { %1181 = vmatprep.subr.bf16.mxu1 %v1342_v18  ;;  %v1365_v54 = vld [vmem:[#allocation5 + $0x120] sm:$0xff]   ;;  %v107_v57 = vld [vmem:[#allocation2 + $0x28] sm:$0xff]  ;;  %v1367_v58 = vld [vmem:[#allocation5 + $0x128] sm:$0xff]  }
  0x6c   :  { %1160 = vmatpush3.bf16.msra.mxu0 %v1341_v17  ;;  %v1372_v56 = vld [vmem:[#allocation5 + $0x180] sm:$0xff]   ;;  %v1368_v59 = vld [vmem:[#allocation5 + $0x170] sm:$0xff]   ;;  %v115_v63 = vld [vmem:[#allocation2 + $0x68] sm:$0xff] }
  0x6d   :  { %1161 = vmatprep.subr.bf16.mxu0 %v1344_v20  ;;  %v114_v60 = vld [vmem:[#allocation2 + $0x60] sm:$0xff]  ;;  %v108_v62 = vld [vmem:[#allocation2 + $0x30] sm:$0xff]  ;;  %v1370_v2 = vld [vmem:[#allocation5 + $0x178] sm:$0xff]  }
  0x6e   :  { %1182 = vmatpush3.bf16.msra.mxu1 %v1343_v19  ;;  %v121_v61 = vpack.c.bf16 %v114_v60, %v107_v57  ;;  %v122_v0 = vpack.c.bf16 %v115_v63, %v108_v62  ;;  %v1369_v1 = vld [vmem:[#allocation5 + $0x130] sm:$0xff]   ;;  %v1371_v3 = vld [vmem:[#allocation5 + $0x138] sm:$0xff]   ;;  %v113_v5 = vld [vmem:[#allocation2 + $0x58] sm:$0xff] }
  0x6f   :  { %1183 = vmatprep.subr.bf16.mxu1 %v1346_v22  ;;  %v106_v4 = vld [vmem:[#allocation2 + $0x20] sm:$0xff]  ;;  %v1373_v7 = vld [vmem:[#allocation7] sm:$0xff]   ;;  %v1375_v9 = vld [vmem:[#allocation7 + $0x10] sm:$0xff]  }
  0x70   :  { %1162 = vmatpush3.bf16.msra.mxu0 %v1345_v21  ;;  %v120_v6 = vpack.c.bf16 %v113_v5, %v106_v4  ;;  %v1374_v8 = vld [vmem:[#allocation7 + $0x8] sm:$0xff]   ;;  %v1376_v10 = vld [vmem:[#allocation7 + $0x18] sm:$0xff]   ;;  %v1377_v11 = vld [vmem:[#allocation7 + $0x20] sm:$0xff]  }
  0x71   :  { %1163 = vmatprep.subr.bf16.mxu0 %v1348_v24  ;;  %v1378_v12 = vld [vmem:[#allocation7 + $0x28] sm:$0xff]   ;;  %v1379_v13 = vld [vmem:[#allocation7 + $0x30] sm:$0xff]   ;;  %v1380_v14 = vld [vmem:[#allocation7 + $0x38] sm:$0xff]  }
  0x72   :  { %1184 = vmatpush3.bf16.msra.mxu1 %v1347_v23  ;;  %v1381_v15 = vld [vmem:[#allocation8] sm:$0xff]   ;;  %v1382_v16 = vld [vmem:[#allocation8 + $0x8] sm:$0xff]   ;;  %v1383_v17 = vld [vmem:[#allocation8 + $0x10] sm:$0xff]  }
  0x73   :  { %1185 = vmatprep.subr.bf16.mxu1 %v1350_v26  ;;  %v1384_v18 = vld [vmem:[#allocation8 + $0x18] sm:$0xff]   ;;  %v1385_v19 = vld [vmem:[#allocation8 + $0x20] sm:$0xff]   ;;  %v1386_v20 = vld [vmem:[#allocation8 + $0x28] sm:$0xff]  }
  0x74   :  { %1164 = vmatpush3.bf16.msra.mxu0 %v1349_v25  ;;  %v1064_v22 = vld [vmem:[%s1733_s2] ss:$0 sm:$0xff]  ;;  %v1388_v57 = vld [vmem:[#allocation8 + $0x38] sm:$0xff]   ;;  %v1391_v60 = vld [vmem:[#allocation10 + $0x10] sm:$0xff]  }
  0x75   :  { %1165 = vmatprep.subr.bf16.mxu0 %v1352_v28  ;;  %v1393_v62 = vld [vmem:[#allocation10 + $0x20] sm:$0xff]   ;;  %v1394_v63 = vld [vmem:[#allocation10 + $0x28] sm:$0xff]  }
  0x76   :  { %1186 = vmatpush3.bf16.msra.mxu1 %v1351_v27 }
  0x77   :  { %1187 = vmatprep.subr.bf16.mxu1 %v1354_v30 }
  0x78   :  { %1166 = vmatpush3.bf16.msra.mxu0 %v1353_v29 }
  0x79   :  { %1195 = vmatprep.subr.bf16.mxu0 %v1356_v38 }
  0x7a   :  { %1188 = vmatpush3.bf16.msra.mxu1 %v1355_v34 }
  0x7b   :  { %1246 = vmatprep.subr.bf16.mxu1 %v1546_v43  ;;  %559 = vmatmul.mubr.bf16.vlgmr.msra.gmra.mrb[0].mxu0 %v116_v37 }
  0x7c   :  { %1196 = vmatpush3.bf16.msra.mxu0 %v1357_v42  ;;  %640 = vmatprep.mubr.bf16.mxu0 %v121_v61  ;;  %v1392_v61 = vld [vmem:[#allocation10 + $0x18] sm:$0xff]  }
  0x7d   :  { %600 = vmatmul.mubr.bf16.vlgmr.msra.gmra.mrb[0].mxu1 %v118_v46  ;;  %1197 = vmatprep.subr.bf16.mxu0 %v1358_v47 }
  0x7e   :  { %1248 = vmatprep.mubr.msk.bf16.mxu1 %vm1547_vm0, %v1546_v43  ;;  %1247 = vmatpush3.bf16.msra.mxu1 %v1372_v56  ;;  %v1387_v56 = vld [vmem:[#allocation8 + $0x30] sm:$0xff]  }
  0x7f   :  { %1252 = vmatprep.subr.bf16.mxu1 %v1546_v43 }
  0x80   :  { %1198 = vmatpush3.bf16.msra.mxu0 %v1359_v48 }
  0x81   :  { %1199 = vmatprep.subr.bf16.mxu0 %v1360_v49 }
  0x84   :  { %1200 = vmatpush3.bf16.msra.mxu0 %v1361_v50 }
  0x85   :  { %1201 = vmatprep.subr.bf16.mxu0 %v1362_v51  ;;  %1249 = vmatmul.mubr.msk.bf16.vlgmr.msra.gmra.mrb[4].mxu1 %vm522_vm1, %v122_v0  ;;  %v1115_v0 = vld [vmem:[%s1735_s4] ss:$0 sm:$0xff] }
  0x86   :  { %1268 = vmatprep.mubr.msk.bf16.mxu1 %vm1547_vm0, %v1546_v43  ;;  %1253 = vmatpush3.bf16.msra.mxu1 %v1373_v7 }
  0x87   :  { %1254 = vmatprep.subr.bf16.mxu1 %v1546_v43 }
  0x88   :  { %1202 = vmatpush3.bf16.msra.mxu0 %v1363_v52 }
  0x89   :  { %1203 = vmatprep.subr.bf16.mxu0 %v1364_v53 }
  0x8a   :  { %1255 = vmatpush3.bf16.msra.mxu1 %v1374_v8 }
  0x8b   :  { %1256 = vmatprep.subr.bf16.mxu1 %v1546_v43 }
  0x8c   :  { %1204 = vmatpush3.bf16.msra.mxu0 %v1365_v54 }
  0x8d   :  { %1205 = vmatprep.subr.bf16.mxu0 %v1366_v55 }
  0x8e   :  { %1257 = vmatpush3.bf16.msra.mxu1 %v1375_v9 }
  0x8f   :  { %1258 = vmatprep.subr.bf16.mxu1 %v1546_v43 }
  0x90   :  { %1206 = vmatpush3.bf16.msra.mxu0 %v1367_v58  ;;  %v1389_v58 = vld [vmem:[#allocation10] sm:$0xff]  }
  0x91   :  { %1207 = vmatprep.subr.bf16.mxu0 %v1368_v59  ;;  %v1390_v59 = vld [vmem:[#allocation10 + $0x8] sm:$0xff]  }
  0x92   :  { %1259 = vmatpush3.bf16.msra.mxu1 %v1376_v10  ;;  %v1395_v10 = vld [vmem:[#allocation10 + $0x30] sm:$0xff]  }
  0x93   :  { %1260 = vmatprep.subr.bf16.mxu1 %v1546_v43 }
  0x94   :  { %1208 = vmatpush3.bf16.msra.mxu0 %v1369_v1 }
  0x95   :  { %1209 = vmatprep.subr.bf16.mxu0 %v1370_v2 }
  0x96   :  { %1261 = vmatpush3.bf16.msra.mxu1 %v1377_v11  ;;  %v1396_v11 = vld [vmem:[#allocation10 + $0x38] sm:$0xff]  }
  0x97   :  { %1262 = vmatprep.subr.bf16.mxu1 %v1546_v43 }
  0x98   :  { %1210 = vmatpush3.bf16.msra.mxu0 %v1371_v3 }
  0x99   :  { %1272 = vmatprep.subr.bf16.mxu0 %v1546_v43 }
  0x9a   :  { %1263 = vmatpush3.bf16.msra.mxu1 %v1378_v12  ;;  %v1124_v12 = vld [vmem:[%s1737_s6] ss:$0 sm:$0xff]  ;;  %s1507_s6 = scalar_lea.vmem %s1051_s14, 128 }
  0x9b   :  { %641 = vmatmul.mubr.bf16.vlgmr.msra.gmra.mrb[4].mxu0 %v120_v6  ;;  %1264 = vmatprep.subr.bf16.mxu1 %v1546_v43  ;;  %p1508_p12 = scmp.ne.s32.totalorder %s1051_s14, %s1507_s6  ;;  %p1513_p0 = scmp.lt.s32.totalorder %s1507_s6, %s1507_s6 }
  0x9c   :  { %1288 = vmatprep.mubr.msk.bf16.mxu0 %vm1547_vm0, %v1546_v43  ;;  %1273 = vmatpush3.bf16.msra.mxu0 %v1381_v15 }
  0x9d   :  { %1274 = vmatprep.subr.bf16.mxu0 %v1546_v43  ;;  %p1514_p1 = por %p1513_p0, %p1512_p13 }
  0x9e   :  { %1265 = vmatpush3.bf16.msra.mxu1 %v1379_v13 }
  0x9f   :  { %1266 = vmatprep.subr.bf16.mxu1 %v1546_v43  ;;  %p1515_p2 = pnand %p1514_p1, %p1508_p12 }
  0xa0   :  { %1275 = vmatpush3.bf16.msra.mxu0 %v1382_v16 }
  0xa1   :  { %1276 = vmatprep.subr.bf16.mxu0 %v1546_v43 }
  0xa2   :  { %1267 = vmatpush3.bf16.msra.mxu1 %v1380_v14 }
  0xa3   :  { %1292 = vmatprep.subr.bf16.mxu1 %v1546_v43 }
  0xa4   :  { %1277 = vmatpush3.bf16.msra.mxu0 %v1383_v17 }
  0xa5   :  { %1278 = vmatprep.subr.bf16.mxu0 %v1546_v43 }
  0xa8   :  { %1279 = vmatpush3.bf16.msra.mxu0 %v1384_v18 }
  0xa9   :  { %1280 = vmatprep.subr.bf16.mxu0 %v1546_v43 }
  0xac   :  { %1281 = vmatpush3.bf16.msra.mxu0 %v1385_v19 }
  0xad   :  { %1282 = vmatprep.subr.bf16.mxu0 %v1546_v43 }
  0xb0   :  { %1283 = vmatpush3.bf16.msra.mxu0 %v1386_v20 }
  0xb1   :  { %1284 = vmatprep.subr.bf16.mxu0 %v1546_v43 }
  0xb4   :  { %1285 = vmatpush3.bf16.msra.mxu0 %v1387_v56 }
  0xb5   :  { %1286 = vmatprep.subr.bf16.mxu0 %v1546_v43 }
  0xb8   :  { %1287 = vmatpush3.bf16.msra.mxu0 %v1388_v57 }
 0x14e   :  { %v1167_v21 = vpop.f32.mrb[0].mxu0 }
 0x14f   :  { %v1168_v23 = vpop.f32.mrb[1].mxu0 }
 0x150   :  { %v1169_v24 = vadd.f32 %v1168_v23, %v1167_v21  ;;  %v1170_v25 = vpop.f32.mrb[2].mxu0  ;;  %v1189_v26 = vpop.f32.mrb[0].mxu1 }
 0x151   :  { %v1171_v27 = vpop.f32.mrb[3].mxu0  ;;  %v1190_v30 = vpop.f32.mrb[1].mxu1 }
 0x152   :  { %v561_v28 = vadd.f32 %v1169_v24, %v1064_v22  ;;  %v1172_v29 = vadd.f32 %v1171_v27, %v1170_v25  ;;  %v1191_v31 = vadd.f32 %v1190_v30, %v1189_v26  ;;  %v1192_v32 = vpop.f32.mrb[2].mxu1 }
 0x153   :  { %v1193_v34 = vpop.f32.mrb[3].mxu1 }
 0x154   :  { %v564_v33 = vadd.f32 %v1172_v29, %v1064_v22  ;;  %v602_v35 = vadd.f32 %v1191_v31, %v561_v28  ;;  %v1194_v36 = vadd.f32 %v1193_v34, %v1192_v32 }
 0x156   :  { %v605_v37 = vadd.f32 %v1194_v36, %v564_v33 }
 0x158   :  { %v683_v38 = vpop.f32.mrb[4].mxu1 }
 0x159   :  { %v1250_v39 = vpop.f32.mrb[5].mxu1 }
 0x15a   :  { %v686_v40 = vpop.f32.mrb[6].mxu1 }
 0x15b   :  { %v1251_v41 = vpop.f32.mrb[7].mxu1 }
 0x16e   :  { %v1211_v42 = vpop.f32.mrb[4].mxu0 }
 0x16f   :  { %v1212_v44 = vpop.f32.mrb[5].mxu0 }
 0x170   :  { %v1213_v45 = vadd.f32 %v1212_v44, %v1211_v42  ;;  %v1214_v46 = vpop.f32.mrb[6].mxu0 }
 0x171   :  { %v1215_v47 = vpop.f32.mrb[7].mxu0 }
 0x172   :  { %v643_v48 = vadd.f32 %v1213_v45, %v602_v35  ;;  %v1216_v49 = vadd.f32 %v1215_v47, %v1214_v46 }
 0x174   :  { %v684_v50 = vadd.f32 %v683_v38, %v643_v48  ;;  %v646_v51 = vadd.f32 %v1216_v49, %v605_v37 }
 0x176   :  { %v687_v52 = vadd.f32 %v686_v40, %v646_v51  ;;  %v690_v53 = vmax.f32 %v684_v50, 0.0 }
 0x178   :  { %v691_v54 = vmax.f32 %v687_v52, 0.0 }
 0x17a   :  { %v692_v55 = vpack.c.bf16 %v691_v54, %v690_v53 }
 0x17c   :  { %1269 = vmatmul.mubr.bf16.vlgmr.msra.gmra.mrb[8].mxu1 %v692_v55 }
 0x17d   :  { %1308 = vmatprep.mubr.msk.bf16.mxu1 %vm1547_vm0, %v1546_v43  ;;  %1293 = vmatpush3.bf16.msra.mxu1 %v1389_v58 }
 0x17e   :  { %1294 = vmatprep.subr.bf16.mxu1 %v1546_v43 }
 0x181   :  { %1295 = vmatpush3.bf16.msra.mxu1 %v1390_v59 }
 0x182   :  { %1296 = vmatprep.subr.bf16.mxu1 %v1546_v43 }
 0x185   :  { %1297 = vmatpush3.bf16.msra.mxu1 %v1391_v60 }
 0x186   :  { %1298 = vmatprep.subr.bf16.mxu1 %v1546_v43 }
 0x189   :  { %1299 = vmatpush3.bf16.msra.mxu1 %v1392_v61 }
 0x18a   :  { %1300 = vmatprep.subr.bf16.mxu1 %v1546_v43 }
 0x18d   :  { %1301 = vmatpush3.bf16.msra.mxu1 %v1393_v62 }
 0x18e   :  { %1302 = vmatprep.subr.bf16.mxu1 %v1546_v43 }
 0x191   :  { %1303 = vmatpush3.bf16.msra.mxu1 %v1394_v63 }
 0x192   :  { %1304 = vmatprep.subr.bf16.mxu1 %v1546_v43 }
 0x195   :  { %1305 = vmatpush3.bf16.msra.mxu1 %v1395_v10 }
 0x196   :  { %1306 = vmatprep.subr.bf16.mxu1 %v1546_v43  ;;  %v1133_v43 = vld [vmem:[%s1739_s8] ss:$0 sm:$0xff] }
 0x199   :  { %1307 = vmatpush3.bf16.msra.mxu1 %v1396_v11 }
 0x24f   :  { %v798_v1 = vpop.f32.mrb[8].mxu1 }
 0x250   :  { %v799_v2 = vadd.f32 %v1115_v0, %v798_v1  ;;  %v1270_v3 = vpop.f32.mrb[9].mxu1 }
 0x251   :  { %v801_v4 = vpop.f32.mrb[10].mxu1 }
 0x252   :  { %v802_v5 = vadd.f32 %v1115_v0, %v801_v4  ;;  %v1271_v6 = vpop.f32.mrb[11].mxu1  ;;  %v805_v7 = vmax.f32 %v799_v2, 0.0 }
 0x254   :  { %v806_v8 = vmax.f32 %v802_v5, 0.0 }
 0x256   :  { %v807_v9 = vpack.c.bf16 %v806_v8, %v805_v7 }
 0x258   :  { %1289 = vmatmul.mubr.bf16.vlgmr.msra.gmra.mrb[8].mxu0 %v807_v9 }
 0x32b   :  { %v913_v13 = vpop.f32.mrb[8].mxu0 }
 0x32c   :  { %v914_v14 = vadd.f32 %v1124_v12, %v913_v13  ;;  %v1290_v15 = vpop.f32.mrb[9].mxu0 }
 0x32d   :  { %v916_v16 = vpop.f32.mrb[10].mxu0 }
 0x32e   :  { %v917_v17 = vadd.f32 %v1124_v12, %v916_v16  ;;  %v1291_v18 = vpop.f32.mrb[11].mxu0  ;;  %v920_v19 = vmax.f32 %v914_v14, 0.0 }
 0x330   :  { %v921_v20 = vmax.f32 %v917_v17, 0.0 }
 0x332   :  { %v922_v21 = vpack.c.bf16 %v921_v20, %v920_v19 }
 0x334   :  { %1309 = vmatmul.mubr.bf16.vlgmr.msra.gmra.mrb[12].mxu1 %v922_v21 }
 0x407   :  { %v1028_v22 = vpop.f32.mrb[12].mxu1 }
 0x408   :  { %v1310_v23 = vpop.f32.mrb[13].mxu1  ;;  %v1029_v25 = vadd.f32 %v1133_v43, %v1028_v22 }
 0x409   :  { %v1031_v24 = vpop.f32.mrb[14].mxu1 }
 0x40a   :  { %v1032_v26 = vadd.f32 %v1133_v43, %v1031_v24  ;;  %v1311_v27 = vpop.f32.mrb[15].mxu1 }
 0x40c   :  { %v1149_v28 = vpack.c.bf16 %v1032_v26, %v1029_v25 }
 0x40e   :  { %1150 = vst [vmem:[#allocation11] sm:$0xff] %v1149_v28  }
 0x40f   :  { %1518 = shalt.err (!%p1515_p2)
}
 0x410   :  { %s1519_s16 = scalar_lea.hbm %s1740_s9, 128 }
 0x411   :  { %p1520_p3 = scmp.ne.s32.totalorder %s1740_s9, %s1519_s16  ;;  %p1523_p4 = scmp.lt.u32.totalorder %s1519_s16, %s1740_s9 }
 0x413   :  { %p1525_p5 = pnand %p1523_p4, %p1520_p3 }
 0x415   :  { %1528 = shalt.err (!%p1525_p5)
}
 0x416   :  { %1056 = dma.vmem_to_hbm [thread:$0]  %s1051_s14, 128, %s1740_s9, [#allocation4], %s1538_s19, %s1538_s19, %s1539_s20  }
 0x417   :  { %1535 = dma.done.wait [#allocation4], 128  }
 0x418   :  { %1536 = vsyncadd [#allocation4], 4294967168 }
 0x419   :  { %1060 = vsyncpa [#allocation3], 1 }
 0x41a   :  { %1061 = vsyncpa [#allocation6], 1 }
 0x41b   :  { %1062 = vsyncpa [#allocation9], 1 }
 0x41c   :  { %1063 = vsyncpa [#allocation4], 1 }

</bundles_post_ra>
